<compile_context>
chip_gen: v7x
topology: tpu7x:2x2x1
jax: 0.10.0
libtpu: 0.0.40
codegen_flags: <defaults>
</compile_context>

<pallas_src>
import functools

import jax
import jax.numpy as jnp
import numpy as np
from jax.experimental import pallas as pl
from jax.experimental.pallas import tpu as pltpu

BN_EPS = 1e-5


def _round_up(x, m):
    return (x + m - 1) // m * m


# --------------------------------- kernels ---------------------------------

def _unsup_kernel(L2, zd, n1,
                  x1_ref, eps_ref,
                  w1_ref, wml_ref, wd2_ref, wd1_ref,
                  bias_ref, bd1_ref,
                  pack_ref, rx1_ref):
    f32 = jnp.float32
    bf16 = jnp.bfloat16

    # encode: relu(bn1(e_fc1_masked(x1)))  (mask + BN folded into w1/bias)
    h1 = jnp.dot(x1_ref[...], w1_ref[...], preferred_element_type=f32)
    level2 = jnp.maximum(h1 + bias_ref[0:1, :L2], 0.0)

    # fused [mean | logvar] head (BN folded), lane-dense 2*zd
    ml = (jnp.dot(level2.astype(bf16), wml_ref[...],
                  preferred_element_type=f32)
          + bias_ref[1:2, :2 * zd])
    mean = ml[:, :zd]
    logvar = ml[:, zd:2 * zd]

    # reparameterize
    z = eps_ref[...] * jnp.exp(0.5 * logvar) + mean

    # decode: relu(bn2(d_fc2(z))) -> sigmoid(bn1(d_fc1_masked(.)))
    d2 = (jnp.dot(z.astype(bf16), wd2_ref[...], preferred_element_type=f32)
          + bias_ref[2:3, :L2])
    lvl = jnp.maximum(d2, 0.0)
    rx1_pre = (jnp.dot(lvl.astype(bf16), wd1_ref[...],
                       preferred_element_type=f32)
               + bd1_ref[...])
    # exact sigmoid (exp issues on the EUP slot); stays in [0, 1]
    rx1_ref[...] = 1.0 / (1.0 + jnp.exp(-rx1_pre))

    # lane-dense packed output slab: [mean | logvar | z]
    pack_ref[...] = jnp.concatenate([ml, z], axis=1)


def _sup_kernel(L2, zd, cox,
                x1_ref, eps_ref, c_ref,
                w1_ref, wml_ref, wc1_ref,
                bias_ref,
                pack_ref):
    f32 = jnp.float32
    bf16 = jnp.bfloat16

    h1 = jnp.dot(x1_ref[...], w1_ref[...], preferred_element_type=f32)
    level2 = jnp.maximum(h1 + bias_ref[0:1, :L2], 0.0)

    ml = (jnp.dot(level2.astype(bf16), wml_ref[...],
                  preferred_element_type=f32)
          + bias_ref[1:2, :2 * zd])
    mean = ml[:, :zd]
    logvar = ml[:, zd:2 * zd]
    z = eps_ref[...] * jnp.exp(0.5 * logvar) + mean

    # cox head on `mean`: c_bn_input folded into wc1 rows [0, zd); the
    # zero-padded clinical rows [zd, zd+8) line up with the lane-padded c tile.
    hid = jnp.tanh(
        jnp.dot(mean.astype(bf16), wc1_ref[:zd, :],
                preferred_element_type=f32)
        + jnp.dot(c_ref[...], wc1_ref[zd:, :], preferred_element_type=f32)
        + bias_ref[3:4, :cox])
    hid = hid * bias_ref[4:5, :cox] + bias_ref[5:6, :cox]        # c_bn2 (eval)
    # c_fc2 (cox -> 1, no bias) as a lane reduction; result stored in lane 0
    y = jnp.sum(hid * bias_ref[6:7, :cox], axis=1, keepdims=True)
    lane = jax.lax.broadcasted_iota(jnp.int32, (mean.shape[0], zd), 1)
    yblock = jnp.where(lane == 0, y, 0.0)

    # lane-dense packed output slab: [mean | logvar | z | y, 0...]
    pack_ref[...] = jnp.concatenate([ml, z, yblock], axis=1)


# ----------------------------- parameter setup -----------------------------

def _linear_init(key, fan_in, fan_out):
    kw, kb = jax.random.split(key)
    bound = 1.0 / float(fan_in) ** 0.5
    w = jax.random.uniform(kw, (fan_out, fan_in), jnp.float32, -bound, bound)
    b = jax.random.uniform(kb, (fan_out,), jnp.float32, -bound, bound)
    return w, b


def _bn_init(key, dim):
    k1, k2, k3, k4 = jax.random.split(key, 4)
    gamma = jax.random.uniform(k1, (dim,), jnp.float32, 0.8, 1.2)
    beta = 0.1 * jax.random.normal(k2, (dim,), jnp.float32)
    rmean = 0.1 * jax.random.normal(k3, (dim,), jnp.float32)
    rvar = jax.random.uniform(k4, (dim,), jnp.float32, 0.5, 1.5)
    return gamma, beta, rmean, rvar


def _bn_fold(bn):
    gamma, beta, rmean, rvar = bn
    scale = gamma / jnp.sqrt(rvar + BN_EPS)
    shift = beta - rmean * scale
    return scale, shift


def init_params(key, z_dim, input_n1, level_2_dim, cox_level2_dim):
    ks = jax.random.split(key, 15)
    p = {}
    p['pathway_mask'] = jax.random.bernoulli(
        ks[0], 0.3, (level_2_dim, input_n1)).astype(jnp.float32)
    p['e_fc1'] = _linear_init(ks[1], input_n1, level_2_dim)
    p['e_bn1'] = _bn_init(ks[2], level_2_dim)
    p['e_fc2_mean'] = _linear_init(ks[3], level_2_dim, z_dim)
    p['e_fc2_logvar'] = _linear_init(ks[4], level_2_dim, z_dim)
    p['e_bn2_mean'] = _bn_init(ks[5], z_dim)
    p['e_bn2_logvar'] = _bn_init(ks[6], z_dim)
    p['d_fc2'] = _linear_init(ks[7], z_dim, level_2_dim)
    p['d_bn2'] = _bn_init(ks[8], level_2_dim)
    p['d_fc1'] = _linear_init(ks[9], level_2_dim, input_n1)
    p['d_bn1'] = _bn_init(ks[10], input_n1)
    p['c_bn_input'] = _bn_init(ks[11], z_dim)
    p['c_fc1'] = _linear_init(ks[12], z_dim + 4, cox_level2_dim)
    p['c_bn2'] = _bn_init(ks[13], cox_level2_dim)
    # c_fc2: Linear(cox_level2_dim, 1, bias=False), weight ~ U(-0.001, 0.001)
    p['c_fc2_w'] = jax.random.uniform(
        ks[14], (1, cox_level2_dim), jnp.float32, -0.001, 0.001)
    return p


# ------------------- wrapper-side folding / packing (static) -------------------

def _fold_params(params):
    mask = params['pathway_mask']                 # (L2, n1)
    L2, n1 = mask.shape
    zd = params['e_fc2_mean'][0].shape[0]
    cox = params['c_fc2_w'].shape[1]
    bf16 = jnp.bfloat16

    # e_fc1 (pathway-masked) + e_bn1 fold
    w1, b1 = params['e_fc1']
    s1, h1 = _bn_fold(params['e_bn1'])
    w1f = (w1 * mask).T * s1[None, :]             # (n1, L2)
    b1f = b1 * s1 + h1

    # fused [mean | logvar] head + BN fold
    wm, bm = params['e_fc2_mean']
    wl, bl = params['e_fc2_logvar']
    sm, hm = _bn_fold(params['e_bn2_mean'])
    sl, hl = _bn_fold(params['e_bn2_logvar'])
    wml = jnp.concatenate([wm.T * sm[None, :], wl.T * sl[None, :]], axis=1)
    bml = jnp.concatenate([bm * sm + hm, bl * sl + hl])

    # d_fc2 + d_bn2 fold
    wd2, bd2 = params['d_fc2']
    sd2, hd2 = _bn_fold(params['d_bn2'])
    wd2f = wd2.T * sd2[None, :]                   # (zd, L2)
    bd2f = bd2 * sd2 + hd2

    # d_fc1 (masked with mask.T) + d_bn1 fold
    wd1, bd1 = params['d_fc1']
    sd1, hd1 = _bn_fold(params['d_bn1'])
    wd1f = (wd1 * mask.T).T * sd1[None, :]        # (L2, n1)
    bd1f = bd1 * sd1 + hd1

    # cox: fold c_bn_input into c_fc1's latent rows; keep c_bn2 as scale/shift
    sin, hin = _bn_fold(params['c_bn_input'])     # (zd,)
    wc1, bc1 = params['c_fc1']                    # (cox, zd+4)
    wc1t = wc1.T                                  # (zd+4, cox)
    wc1f = jnp.concatenate(
        [wc1t[:zd] * sin[:, None],
         jnp.pad(wc1t[zd:], ((0, 4), (0, 0)))], axis=0)   # (zd+8, cox)
    bc1f = bc1 + hin @ wc1t[:zd]
    s2, h2 = _bn_fold(params['c_bn2'])
    wc2row = params['c_fc2_w'][0]                 # (cox,)

    # small per-feature rows -> ONE (8, wsmall) f32 pack (does NOT scale w/ n1)
    wsmall = _round_up(max(L2, 2 * zd, cox), 128)

    def pad_row(v):
        return jnp.pad(v.astype(jnp.float32), (0, wsmall - v.shape[0]))[None, :]

    bias_pack = jnp.concatenate(
        [pad_row(b1f), pad_row(bml), pad_row(bd2f), pad_row(bc1f),
         pad_row(s2), pad_row(h2), pad_row(wc2row),
         jnp.zeros((1, wsmall), jnp.float32)], axis=0)        # (8, wsmall)

    fold = {
        'w1f': w1f.astype(bf16), 'wml': wml.astype(bf16),
        'wd2f': wd2f.astype(bf16), 'wd1f': wd1f.astype(bf16),
        'wc1f': wc1f.astype(bf16),
        'bias_pack': bias_pack,
        'bd1f_row': bd1f.astype(jnp.float32)[None, :],        # (1, n1)
    }
    return fold, (int(L2), int(zd), int(n1), int(cox))


# ----------------------------- forward wrapper -----------------------------

def surv_omivae_forward(params, x1, c1, c2, c3, c4, eps_noise,
                        s_dropout=False, phase='unsup', bm=None):
    if s_dropout:
        # TODO(synk): training-time dropout paths not implemented.
        raise NotImplementedError("s_dropout=True is not implemented")
    if phase not in ('unsup', 'sup'):
        raise NotImplementedError('Phase [%s] does not exist.' % phase)

    fold, (L2, zd, n1, cox) = _fold_params(params)

    B = x1.shape[0]
    if bm is None:
        bm = min(128, _round_up(B, 8))
    bm = max(8, _round_up(int(bm), 8))
    Bp = _round_up(B, bm)
    pad = Bp - B
    grid = (Bp // bm,)

    # activations: x1 shipped as bf16 (MXU input dtype), eps stays f32
    x1b = jnp.pad(x1.astype(jnp.bfloat16), ((0, pad), (0, 0)))   # (Bp, n1)
    epsb = jnp.pad(eps_noise.astype(jnp.float32), ((0, pad), (0, 0)))

    def batch_spec(width):
        return pl.BlockSpec((bm, width), lambda i: (i, 0))

    def resident_spec(arr):
        # full-array block + constant block index -> DMA'd once, stays in VMEM
        return pl.BlockSpec(arr.shape, lambda i: (0, 0))

    cparams = pltpu.CompilerParams(dimension_semantics=("parallel",))

    if phase == 'unsup':
        kernel = functools.partial(_unsup_kernel, L2, zd, n1)
        args = (x1b, epsb, fold['w1f'], fold['wml'], fold['wd2f'],
                fold['wd1f'], fold['bias_pack'], fold['bd1f_row'])
        in_specs = [
            batch_spec(n1), batch_spec(zd),
            resident_spec(fold['w1f']), resident_spec(fold['wml']),
            resident_spec(fold['wd2f']), resident_spec(fold['wd1f']),
            resident_spec(fold['bias_pack']), resident_spec(fold['bd1f_row']),
        ]
        out_shape = (jax.ShapeDtypeStruct((Bp, 3 * zd), jnp.float32),
                     jax.ShapeDtypeStruct((Bp, n1), jnp.float32))
        out_specs = (batch_spec(3 * zd), batch_spec(n1))
    else:
        # clinical covariates, zero-padded to 8 lanes (matches wc1f zero rows)
        c = jnp.concatenate([c1, c2, c3, c4], axis=1).astype(jnp.float32)
        cb = jnp.pad(c, ((0, pad), (0, 4))).astype(jnp.bfloat16)   # (Bp, 8)
        kernel = functools.partial(_sup_kernel, L2, zd, cox)
        args = (x1b, epsb, cb, fold['w1f'], fold['wml'], fold['wc1f'],
                fold['bias_pack'])
        in_specs = [
            batch_spec(n1), batch_spec(zd), batch_spec(8),
            resident_spec(fold['w1f']), resident_spec(fold['wml']),
            resident_spec(fold['wc1f']), resident_spec(fold['bias_pack']),
        ]
        out_shape = (jax.ShapeDtypeStruct((Bp, 4 * zd), jnp.float32),)
        out_specs = (batch_spec(4 * zd),)

    outs = pl.pallas_call(
        kernel,
        grid=grid,
        out_shape=out_shape,
        in_specs=in_specs,
        out_specs=out_specs,
        compiler_params=cparams,
    )(*args)

    pack = outs[0][:B]
    mean = pack[:, :zd]
    logvar = pack[:, zd:2 * zd]
    z = pack[:, 2 * zd:3 * zd]

    if phase == 'unsup':
        recon_x1 = outs[1][:B]
        return z, recon_x1, mean, logvar, 'Currently in unsupervised phase.'
    else:
        y = pack[:, 3 * zd:3 * zd + 1]
        return z, 'Currently in supervised phase.', mean, logvar, y


# ----------------------------- pure-JAX reference -----------------------------

def _reference_forward(params, x1, c1, c2, c3, c4, eps_noise, phase):
    def bn(v, p):
        gamma, beta, rmean, rvar = p
        return (v - rmean) / jnp.sqrt(rvar + BN_EPS) * gamma + beta

    mask = params['pathway_mask']
    w1, b1 = params['e_fc1']
    level2 = jax.nn.relu(bn(x1 @ (w1 * mask).T + b1, params['e_bn1']))
    wm, bm = params['e_fc2_mean']
    wl, bl = params['e_fc2_logvar']
    mean = bn(level2 @ wm.T + bm, params['e_bn2_mean'])
    logvar = bn(level2 @ wl.T + bl, params['e_bn2_logvar'])
    z = eps_noise * jnp.exp(0.5 * logvar) + mean
    if phase == 'unsup':
        wd2, bd2 = params['d_fc2']
        lvl = jax.nn.relu(bn(z @ wd2.T + bd2, params['d_bn2']))
        wd1, bd1 = params['d_fc1']
        rx1 = jax.nn.sigmoid(bn(lvl @ (wd1 * mask.T).T + bd1, params['d_bn1']))
        return z, rx1, mean, logvar, None
    lat = bn(mean, params['c_bn_input'])
    clin = jnp.concatenate([lat, c1, c2, c3, c4], axis=1)
    wc1, bc1 = params['c_fc1']
    hid = jnp.tanh(clin @ wc1.T + bc1)
    hid = bn(hid, params['c_bn2'])
    y = hid @ params['c_fc2_w'].T
    return z, None, mean, logvar, y


if __name__ == "__main__":
    key = jax.random.PRNGKey(0)
    B = 20              # exercises batch grid (bm=8 -> 3 tiles) + row padding
    input_n1 = 256      # gene features
    level_2_dim = 128   # Pathway_Mask.size(0)
    z_dim = 64
    cox_level2_dim = 32

    keys = jax.random.split(key, 7)
    x1 = jax.random.uniform(keys[0], (B, input_n1), jnp.float32)
    c1 = jax.random.normal(keys[1], (B, 1), jnp.float32)
    c2 = jax.random.normal(keys[2], (B, 1), jnp.float32)
    c3 = jax.random.normal(keys[3], (B, 1), jnp.float32)
    c4 = jax.random.normal(keys[4], (B, 1), jnp.float32)
    eps_noise = jax.random.normal(keys[5], (B, z_dim), jnp.float32)  # reparam z

    params = init_params(keys[6], z_dim, input_n1, level_2_dim, cox_level2_dim)

    z_u, rx1_u, mean_u, logvar_u, msg_u = surv_omivae_forward(
        params, x1, c1, c2, c3, c4, eps_noise, phase='unsup', bm=8)
    z_s, msg_s, mean_s, logvar_s, y_s = surv_omivae_forward(
        params, x1, c1, c2, c3, c4, eps_noise, phase='sup', bm=8)
    jax.block_until_ready([z_u, rx1_u, mean_u, logvar_u, z_s, mean_s,
                           logvar_s, y_s])

    assert z_u.shape == (B, z_dim) and mean_u.shape == (B, z_dim)
    assert logvar_u.shape == (B, z_dim) and rx1_u.shape == (B, input_n1)
    assert y_s.shape == (B, 1)
    assert isinstance(msg_u, str) and isinstance(msg_s, str)
    assert float(jnp.min(rx1_u)) >= 0.0 and float(jnp.max(rx1_u)) <= 1.0

    # numerical check vs pure-JAX f32 reference (bf16 weights -> loose tol)
    zr, rx1r, meanr, logvarr, _ = _reference_forward(
        params, x1, c1, c2, c3, c4, eps_noise, 'unsup')
    _, _, _, _, yr = _reference_forward(
        params, x1, c1, c2, c3, c4, eps_noise, 'sup')
    for got, want in [(z_u, zr), (rx1_u, rx1r), (mean_u, meanr),
                      (logvar_u, logvarr), (z_s, zr), (y_s, yr)]:
        np.testing.assert_allclose(np.asarray(got), np.asarray(want),
                                   rtol=5e-2, atol=5e-2)

    print("KERNEL_OK")
</pallas_src>

<mosaic_0001>
module attributes {stable_mosaic.version = 11 : i64} {
  func.func @_unsup_kernel(%arg0: i32, %arg1: memref<8x256xbf16, #tpu.memory_space<vmem>>, %arg2: memref<8x64xf32, #tpu.memory_space<vmem>>, %arg3: memref<256x128xbf16, #tpu.memory_space<vmem>>, %arg4: memref<128x128xbf16, #tpu.memory_space<vmem>>, %arg5: memref<64x128xbf16, #tpu.memory_space<vmem>>, %arg6: memref<128x256xbf16, #tpu.memory_space<vmem>>, %arg7: memref<8x128xf32, #tpu.memory_space<vmem>>, %arg8: memref<1x256xf32, #tpu.memory_space<vmem>>, %arg9: memref<8x192xf32, #tpu.memory_space<vmem>>, %arg10: memref<8x256xf32, #tpu.memory_space<vmem>>) attributes {dimension_semantics = [#tpu.dimension_semantics<parallel>], iteration_bounds = array<i64: 3>, scalar_prefetch = 0 : i64, scratch_operands = 0 : i64, tpu.core_type = #tpu.core_type<tc>, window_params = [{transform_indices = @transform_0, window_bounds = array<i64: 8, 256>}, {transform_indices = @transform_1, window_bounds = array<i64: 8, 64>}, {pipeline_mode = #tpu.pipeline_mode<synchronous>, transform_indices = @transform_2, window_bounds = array<i64: 256, 128>}, {pipeline_mode = #tpu.pipeline_mode<synchronous>, transform_indices = @transform_3, window_bounds = array<i64: 128, 128>}, {pipeline_mode = #tpu.pipeline_mode<synchronous>, transform_indices = @transform_4, window_bounds = array<i64: 64, 128>}, {pipeline_mode = #tpu.pipeline_mode<synchronous>, transform_indices = @transform_5, window_bounds = array<i64: 128, 256>}, {pipeline_mode = #tpu.pipeline_mode<synchronous>, transform_indices = @transform_6, window_bounds = array<i64: 8, 128>}, {pipeline_mode = #tpu.pipeline_mode<synchronous>, transform_indices = @transform_7, window_bounds = array<i64: 1, 256>}, {transform_indices = @transform_8, window_bounds = array<i64: 8, 192>}, {transform_indices = @transform_9, window_bounds = array<i64: 8, 256>}]} {
    %c0 = arith.constant 0 : index
    %c0_0 = arith.constant 0 : index
    %0 = vector.load %arg1[%c0, %c0_0] : memref<8x256xbf16, #tpu.memory_space<vmem>>, vector<8x256xbf16>
    %c0_1 = arith.constant 0 : index
    %c0_2 = arith.constant 0 : index
    %1 = vector.load %arg3[%c0_1, %c0_2] : memref<256x128xbf16, #tpu.memory_space<vmem>>, vector<256x128xbf16>
    %cst = arith.constant dense<0.000000e+00> : vector<8x128xf32>
    %2 = tpu.matmul %0, %1, %cst {dimension_numbers = #tpu.dot_dimension_numbers<[1], [0], [0], [1], [0, 0, 1, 1], [], []>} : vector<8x256xbf16>, vector<256x128xbf16>, vector<8x128xf32> -> vector<8x128xf32>
    %c0_3 = arith.constant 0 : index
    %c0_4 = arith.constant 0 : index
    %3 = vector.load %arg7[%c0_3, %c0_4] : memref<8x128xf32, #tpu.memory_space<vmem>>, vector<1x128xf32>
    %4 = vector.broadcast %3 : vector<1x128xf32> to vector<8x128xf32>
    %5 = arith.addf %2, %4 : vector<8x128xf32>
    %cst_5 = arith.constant 0.000000e+00 : f32
    %6 = vector.broadcast %cst_5 : f32 to vector<8x128xf32>
    %7 = arith.maximumf %5, %6 : vector<8x128xf32>
    %8 = arith.truncf %7 : vector<8x128xf32> to vector<8x128xbf16>
    %c0_6 = arith.constant 0 : index
    %c0_7 = arith.constant 0 : index
    %9 = vector.load %arg4[%c0_6, %c0_7] : memref<128x128xbf16, #tpu.memory_space<vmem>>, vector<128x128xbf16>
    %cst_8 = arith.constant dense<0.000000e+00> : vector<8x128xf32>
    %10 = tpu.matmul %8, %9, %cst_8 {dimension_numbers = #tpu.dot_dimension_numbers<[1], [0], [0], [1], [0, 0, 1, 1], [], []>} : vector<8x128xbf16>, vector<128x128xbf16>, vector<8x128xf32> -> vector<8x128xf32>
    %c1 = arith.constant 1 : index
    %c0_9 = arith.constant 0 : index
    %11 = vector.load %arg7[%c1, %c0_9] : memref<8x128xf32, #tpu.memory_space<vmem>>, vector<1x128xf32>
    %12 = vector.broadcast %11 : vector<1x128xf32> to vector<8x128xf32>
    %13 = arith.addf %10, %12 : vector<8x128xf32>
    %14 = vector.extract_strided_slice %13 {offsets = [0, 0], sizes = [8, 64], strides = [1, 1]} : vector<8x128xf32> to vector<8x64xf32>
    %15 = vector.extract_strided_slice %13 {offsets = [0, 64], sizes = [8, 64], strides = [1, 1]} : vector<8x128xf32> to vector<8x64xf32>
    %c0_10 = arith.constant 0 : index
    %c0_11 = arith.constant 0 : index
    %16 = vector.load %arg2[%c0_10, %c0_11] : memref<8x64xf32, #tpu.memory_space<vmem>>, vector<8x64xf32>
    %cst_12 = arith.constant 5.000000e-01 : f32
    %17 = vector.broadcast %cst_12 : f32 to vector<8x64xf32>
    %18 = arith.mulf %17, %15 : vector<8x64xf32>
    %19 = math.exp %18 : vector<8x64xf32>
    %20 = arith.mulf %16, %19 : vector<8x64xf32>
    %21 = arith.addf %20, %14 : vector<8x64xf32>
    %22 = arith.truncf %21 : vector<8x64xf32> to vector<8x64xbf16>
    %c0_13 = arith.constant 0 : index
    %c0_14 = arith.constant 0 : index
    %23 = vector.load %arg5[%c0_13, %c0_14] : memref<64x128xbf16, #tpu.memory_space<vmem>>, vector<64x128xbf16>
    %cst_15 = arith.constant dense<0.000000e+00> : vector<8x128xf32>
    %24 = tpu.matmul %22, %23, %cst_15 {dimension_numbers = #tpu.dot_dimension_numbers<[1], [0], [0], [1], [0, 0, 1, 1], [], []>} : vector<8x64xbf16>, vector<64x128xbf16>, vector<8x128xf32> -> vector<8x128xf32>
    %c2 = arith.constant 2 : index
    %c0_16 = arith.constant 0 : index
    %25 = vector.load %arg7[%c2, %c0_16] : memref<8x128xf32, #tpu.memory_space<vmem>>, vector<1x128xf32>
    %26 = vector.broadcast %25 : vector<1x128xf32> to vector<8x128xf32>
    %27 = arith.addf %24, %26 : vector<8x128xf32>
    %cst_17 = arith.constant 0.000000e+00 : f32
    %28 = vector.broadcast %cst_17 : f32 to vector<8x128xf32>
    %29 = arith.maximumf %27, %28 : vector<8x128xf32>
    %30 = arith.truncf %29 : vector<8x128xf32> to vector<8x128xbf16>
    %c0_18 = arith.constant 0 : index
    %c0_19 = arith.constant 0 : index
    %31 = vector.load %arg6[%c0_18, %c0_19] : memref<128x256xbf16, #tpu.memory_space<vmem>>, vector<128x256xbf16>
    %cst_20 = arith.constant dense<0.000000e+00> : vector<8x256xf32>
    %32 = tpu.matmul %30, %31, %cst_20 {dimension_numbers = #tpu.dot_dimension_numbers<[1], [0], [0], [1], [0, 0, 1, 1], [], []>} : vector<8x128xbf16>, vector<128x256xbf16>, vector<8x256xf32> -> vector<8x256xf32>
    %c0_21 = arith.constant 0 : index
    %c0_22 = arith.constant 0 : index
    %33 = vector.load %arg8[%c0_21, %c0_22] : memref<1x256xf32, #tpu.memory_space<vmem>>, vector<1x256xf32>
    %34 = vector.broadcast %33 : vector<1x256xf32> to vector<8x256xf32>
    %35 = arith.addf %32, %34 : vector<8x256xf32>
    %cst_23 = arith.constant 0.000000e+00 : f32
    %36 = vector.broadcast %cst_23 : f32 to vector<8x256xf32>
    %37 = arith.subf %36, %35 : vector<8x256xf32>
    %38 = math.exp %37 : vector<8x256xf32>
    %cst_24 = arith.constant 1.000000e+00 : f32
    %39 = vector.broadcast %cst_24 : f32 to vector<8x256xf32>
    %40 = arith.addf %39, %38 : vector<8x256xf32>
    %cst_25 = arith.constant 1.000000e+00 : f32
    %41 = vector.broadcast %cst_25 : f32 to vector<8x256xf32>
    %42 = arith.divf %41, %40 : vector<8x256xf32>
    %c0_26 = arith.constant 0 : index
    %c0_27 = arith.constant 0 : index
    %43 = vector.load %arg10[%c0_26, %c0_27] : memref<8x256xf32, #tpu.memory_space<vmem>>, vector<8x256xf32>
    tpu.vector_store %arg10[%c0_26, %c0_27], %42 {strides = array<i32>} : memref<8x256xf32, #tpu.memory_space<vmem>>, vector<8x256xf32>,
    %44 = tpu.concatenate %13, %21 in 1 : vector<8x128xf32>, vector<8x64xf32> -> vector<8x192xf32>
    %c0_28 = arith.constant 0 : index
    %c0_29 = arith.constant 0 : index
    %45 = vector.load %arg9[%c0_28, %c0_29] : memref<8x192xf32, #tpu.memory_space<vmem>>, vector<8x192xf32>
    tpu.vector_store %arg9[%c0_28, %c0_29], %44 {strides = array<i32>} : memref<8x192xf32, #tpu.memory_space<vmem>>, vector<8x192xf32>,
    return
  }
  func.func @transform_0(%arg0: i32) -> (i32, i32) {
    %c0_i32 = arith.constant 0 : i32
    %c0_i32_0 = arith.constant 0 : i32
    return %arg0, %c0_i32 : i32, i32
  }
  func.func @transform_1(%arg0: i32) -> (i32, i32) {
    %c0_i32 = arith.constant 0 : i32
    %c0_i32_0 = arith.constant 0 : i32
    return %arg0, %c0_i32 : i32, i32
  }
  func.func @transform_2(%arg0: i32) -> (i32, i32) {
    %c0_i32 = arith.constant 0 : i32
    %c0_i32_0 = arith.constant 0 : i32
    %c0_i32_1 = arith.constant 0 : i32
    return %c0_i32, %c0_i32_0 : i32, i32
  }
  func.func @transform_3(%arg0: i32) -> (i32, i32) {
    %c0_i32 = arith.constant 0 : i32
    %c0_i32_0 = arith.constant 0 : i32
    %c0_i32_1 = arith.constant 0 : i32
    return %c0_i32, %c0_i32_0 : i32, i32
  }
  func.func @transform_4(%arg0: i32) -> (i32, i32) {
    %c0_i32 = arith.constant 0 : i32
    %c0_i32_0 = arith.constant 0 : i32
    %c0_i32_1 = arith.constant 0 : i32
    return %c0_i32, %c0_i32_0 : i32, i32
  }
  func.func @transform_5(%arg0: i32) -> (i32, i32) {
    %c0_i32 = arith.constant 0 : i32
    %c0_i32_0 = arith.constant 0 : i32
    %c0_i32_1 = arith.constant 0 : i32
    return %c0_i32, %c0_i32_0 : i32, i32
  }
  func.func @transform_6(%arg0: i32) -> (i32, i32) {
    %c0_i32 = arith.constant 0 : i32
    %c0_i32_0 = arith.constant 0 : i32
    %c0_i32_1 = arith.constant 0 : i32
    return %c0_i32, %c0_i32_0 : i32, i32
  }
  func.func @transform_7(%arg0: i32) -> (i32, i32) {
    %c0_i32 = arith.constant 0 : i32
    %c0_i32_0 = arith.constant 0 : i32
    %c0_i32_1 = arith.constant 0 : i32
    return %c0_i32, %c0_i32_0 : i32, i32
  }
  func.func @transform_8(%arg0: i32) -> (i32, i32) {
    %c0_i32 = arith.constant 0 : i32
    %c0_i32_0 = arith.constant 0 : i32
    return %arg0, %c0_i32 : i32, i32
  }
  func.func @transform_9(%arg0: i32) -> (i32, i32) {
    %c0_i32 = arith.constant 0 : i32
    %c0_i32_0 = arith.constant 0 : i32
    return %arg0, %c0_i32 : i32, i32
  }
}

</mosaic_0001>

<bundles_post_ra>
// kernel: tpu_custom_call.1
= control target key start
LH: loop header
LB: loop body
LE: loop exit
PB: predicated region body
PF: predicated region fallthrough
CT: control target
= control target key end

     0   :  { %s2273_s0 = inlined_call_operand.hbm [shape: bf16[24,256], index: 0, kind: input, shape index: {}]   ;;  %s2274_s1 = inlined_call_operand.hbm [shape: f32[24,64], index: 1, kind: input, shape index: {}]   ;;  %s2275_s2 = inlined_call_operand.hbm [shape: bf16[256,128], index: 2, kind: input, shape index: {}]   ;;  %s2276_s3 = inlined_call_operand.hbm [shape: bf16[128,128], index: 3, kind: input, shape index: {}]   ;;  %s2277_s4 = inlined_call_operand.hbm [shape: bf16[64,128], index: 4, kind: input, shape index: {}]   ;;  %s2278_s5 = inlined_call_operand.hbm [shape: bf16[128,256], index: 5, kind: input, shape index: {}]   ;;  %s2279_s6 = inlined_call_operand.vmem [shape: f32[8,128], index: 6, kind: input, shape index: {}]   ;;  %s2280_s7 = inlined_call_operand.vmem [shape: f32[1,256], index: 7, kind: input, shape index: {}]   ;;  %s2281_s8 = inlined_call_operand.hbm [shape: f32[24,192], index: 8, kind: output, shape index: {0}]   ;;  %s2282_s9 = inlined_call_operand.hbm [shape: f32[24,256], index: 9, kind: output, shape index: {1}]  }
   0x1   :  { %2288 = sst [smem:[#allocation24_spill]] %s2275_s2 }
   0x2   :  { %2289 = sst [smem:[#allocation25_spill]] %s2276_s3 }
   0x3   :  { %2290 = sst [smem:[#allocation26_spill]] %s2277_s4 }
   0x4   :  { %2291 = sst [smem:[#allocation27_spill]] %s2278_s5 }
   0x5   :  { %2292 = sst [smem:[#allocation28_spill]] %s2282_s9 }
   0x6   :  { %15 = vsyncpa [#allocation3], 0 }
   0x7   :  { %17 = vsyncpa [#allocation3 + $0x1], 0 }
   0x8   :  { %18 = vsyncpa [#allocation6], 0 }
   0x9   :  { %20 = vsyncpa [#allocation6 + $0x1], 0 }
   0xa   :  { %21 = vsyncpa [#allocation9], 0 }
   0xb   :  { %22 = vsyncpa [#allocation12], 0 }
   0xc   :  { %23 = vsyncpa [#allocation4], 0 }
   0xd   :  { %25 = vsyncpa [#allocation4 + $0x1], 0 }
   0xe   :  { %26 = vsyncpa [#allocation15], 0 }
   0xf   :  { %28 = vsyncpa [#allocation15 + $0x1], 0  ;;  %s1877_s30 = smov 0   ;;  %s1879_s10 = smov 0  }
  0x10   :  { %s1881_s11 = smov 0   ;;  %s1883_s12 = smov 0  }
  0x11 LB: > { %s1811_s13 = smov [#allocation7]   ;;  %s1898_s15 = sadd.s32 4294967295, %s1809_s12   ;;  %s1809_s12 = sphi %s1883_s12, %s2322_s12   ;;  %s1805_s11 = sphi %s1881_s11, %s2321_s11   ;;  %s1801_s10 = sphi %s1879_s10, %s2320_s10   ;;  %s1797_s30 = sphi %s1877_s30, %s2319_s30  }
  0x12   : > { %s281_s14 = sshll.u32 %s1811_s13, 4  ;;  %p1205_p0 = scmp.ge.s32.totalorder %s1809_s12, 1  ;;  %s1903_s14 = int_to_ptr.vmem [resolvable:$true] %s281_s14 }
  0x13   : > { %p2284_p1 = scmp.eq.s32.totalorder %s1898_s15, 0  ;;  %p269_p2 = scmp.lt.s32.totalorder %s1809_s12, 4 }
  0x14   : > { %s1812_s17 = smov [#allocation8]   ;;  %s1813_s20 = smov [#allocation10]  }
  0x15   : > { %p1905_p3 = pnand %p1205_p0, %p269_p2  ;;  %s294_s18 = sshll.u32 %s1812_s17, 4  ;;  %s1917_s18 = int_to_ptr.vmem [resolvable:$true] %s294_s18 }
  0x16   : > { %s307_s21 = sshll.u32 %s1813_s20, 4  ;;  %s2295_s2 = sld [smem:[#allocation24_spill]]  ;;  %s1919_s21 = int_to_ptr.vmem [resolvable:$true] %s307_s21 }
  0x17   : > { %s2293_s16 = scalar_select %p1905_p3, 1, 0 }
  0x18   : > { %p1378_p4 = pneg %p1905_p3 }
  0x1a   : > { %p1913_p5 = pnand %p1378_p4, %p2284_p1 }
  0x1c   : > { %s1523_s24 = scalar_lea.hbm %s2295_s2, 2048  ;;  %p1929_p7 = pneg %p1913_p5 }
  0x1d   : > { %p1524_p6 = scmp.ne.s32.totalorder %s2295_s2, %s1523_s24  ;;  %p1530_p10 = scmp.lt.u32.totalorder %s1523_s24, %s2295_s2 }
  0x1f   : > { %p1526_p8 = pnand %p1929_p7, %p1524_p6 }
  0x21   : > { %p1527_p9 = pneg %p1526_p8 }
  0x23   : > { %p1532_p11 = pnand %p1530_p10, %p1527_p9 }
  0x25   : > { %1535 = shalt.err (!%p1532_p11)
}
  0x26   : > { %s1536_s13 = scalar_lea.vmem %s1903_s14, 2048  ;;  %p1544_p2 = scmp.lt.s32.totalorder %s1903_s14, %s1903_s14 }
  0x27   : > { %p1537_p12 = scmp.ne.s32.totalorder %s1903_s14, %s1536_s13  ;;  %p1545_p4 = scmp.lt.s32.totalorder %s1536_s13, %s1536_s13 }
  0x29   : > { %p1539_p13 = pnand %p1537_p12, %p1929_p7  ;;  %p1546_p6 = por %p1545_p4, %p1544_p2 }
  0x2b   : > { %p1540_p0 = pneg %p1539_p13 }
  0x2d   : > { %p1547_p8 = pnand %p1546_p6, %p1540_p0 }
  0x2f   : > { %1550 = shalt.err (!%p1547_p8)
}
  0x30   : > { %s1814_s17 = smov 64   ;;  %s1815_s20 = smov 4  }
  0x31   : > { %1381 = dma.hbm_to_vmem [thread:$0]  (!%p1913_p5), %s2295_s2, 2048, %s1903_s14, [#allocation6], %s1814_s17, %s1814_s17, %s1815_s20  }
  0x32   : > { %s2297_s3 = sld [smem:[#allocation25_spill]] }
  0x38   : > { %s1551_s26 = scalar_lea.hbm %s2297_s3, 1024 }
  0x39   : > { %p1552_p9 = scmp.ne.s32.totalorder %s2297_s3, %s1551_s26  ;;  %p1558_p12 = scmp.lt.u32.totalorder %s1551_s26, %s2297_s3 }
  0x3b   : > { %p1554_p10 = pnand %p1552_p9, %p1929_p7 }
  0x3d   : > { %p1555_p11 = pneg %p1554_p10 }
  0x3f   : > { %p1560_p13 = pnand %p1558_p12, %p1555_p11 }
  0x41   : > { %1563 = shalt.err (!%p1560_p13)
}
  0x42   : > { %s1564_s14 = scalar_lea.vmem %s1917_s18, 1024  ;;  %p1572_p6 = scmp.lt.s32.totalorder %s1917_s18, %s1917_s18 }
  0x43   : > { %p1565_p0 = scmp.ne.s32.totalorder %s1917_s18, %s1564_s14  ;;  %p1573_p8 = scmp.lt.s32.totalorder %s1564_s14, %s1564_s14 }
  0x45   : > { %p1567_p2 = pnand %p1565_p0, %p1929_p7  ;;  %p1574_p9 = por %p1573_p8, %p1572_p6 }
  0x47   : > { %p1568_p4 = pneg %p1567_p2 }
  0x49   : > { %p1575_p10 = pnand %p1574_p9, %p1568_p4 }
  0x4b   : > { %1578 = shalt.err (!%p1575_p10)
}
  0x4c   : > { %1384 = dma.hbm_to_vmem [thread:$0]  (!%p1913_p5), %s2297_s3, 1024, %s1917_s18, [#allocation9], %s1814_s17, %s1814_s17, %s1815_s20  }
  0x4d   : > { %s2298_s4 = sld [smem:[#allocation26_spill]] }
  0x53   : > { %s1579_s25 = scalar_lea.hbm %s2298_s4, 512 }
  0x54   : > { %p1580_p11 = scmp.ne.s32.totalorder %s2298_s4, %s1579_s25  ;;  %p1586_p0 = scmp.lt.u32.totalorder %s1579_s25, %s2298_s4 }
  0x56   : > { %p1582_p12 = pnand %p1580_p11, %p1929_p7 }
  0x58   : > { %p1583_p13 = pneg %p1582_p12 }
  0x5a   : > { %p1588_p2 = pnand %p1586_p0, %p1583_p13 }
  0x5c   : > { %1591 = shalt.err (!%p1588_p2)
}
  0x5d   : > { %s1592_s18 = scalar_lea.vmem %s1919_s21, 512  ;;  %p1600_p9 = scmp.lt.s32.totalorder %s1919_s21, %s1919_s21 }
  0x5e   : > { %p1593_p4 = scmp.ne.s32.totalorder %s1919_s21, %s1592_s18  ;;  %p1601_p10 = scmp.lt.s32.totalorder %s1592_s18, %s1592_s18 }
  0x60   : > { %p1595_p6 = pnand %p1593_p4, %p1929_p7  ;;  %p1602_p11 = por %p1601_p10, %p1600_p9 }
  0x62   : > { %p1596_p8 = pneg %p1595_p6 }
  0x64   : > { %p1603_p12 = pnand %p1602_p11, %p1596_p8 }
  0x66   : > { %1606 = shalt.err (!%p1603_p12)
}
  0x67   : > { %1387 = dma.hbm_to_vmem [thread:$0]  (!%p1913_p5), %s2298_s4, 512, %s1919_s21, [#allocation9], %s1814_s17, %s1814_s17, %s1815_s20  }
  0x68   : > { %s1816_s22 = smov [#allocation11]   ;;  %s2299_s5 = sld [smem:[#allocation27_spill]] }
  0x69   : > { %s320_s23 = sshll.u32 %s1816_s22, 4  ;;  %s321_s23 = int_to_ptr.vmem [resolvable:$true] %s320_s23 }
  0x6e   : > { %s1607_s26 = scalar_lea.hbm %s2299_s5, 2048 }
  0x6f   : > { %p1608_p13 = scmp.ne.s32.totalorder %s2299_s5, %s1607_s26  ;;  %p1614_p4 = scmp.lt.u32.totalorder %s1607_s26, %s2299_s5 }
  0x71   : > { %p1610_p0 = pnand %p1608_p13, %p1929_p7 }
  0x73   : > { %p1611_p2 = pneg %p1610_p0 }
  0x75   : > { %p1616_p6 = pnand %p1614_p4, %p1611_p2 }
  0x77   : > { %1619 = shalt.err (!%p1616_p6)
}
  0x78   : > { %s1620_s21 = scalar_lea.vmem %s321_s23, 2048  ;;  %p1628_p11 = scmp.lt.s32.totalorder %s321_s23, %s321_s23 }
  0x79   : > { %p1621_p8 = scmp.ne.s32.totalorder %s321_s23, %s1620_s21  ;;  %p1629_p12 = scmp.lt.s32.totalorder %s1620_s21, %s1620_s21 }
  0x7b   : > { %p1623_p9 = pnand %p1621_p8, %p1929_p7  ;;  %p1630_p1 = por %p1629_p12, %p1628_p11 }
  0x7d   : > { %p1624_p10 = pneg %p1623_p9 }
  0x7f   : > { %p1631_p3 = pnand %p1630_p1, %p1624_p10 }
  0x81   : > { %1634 = shalt.err (!%p1631_p3)
}
  0x82   : > { %s1817_s17 = smov 128   ;;  %s1818_s27 = smov 8  }
  0x83   : > { %1390 = dma.hbm_to_vmem [thread:$0]  (!%p1913_p5), %s2299_s5, 2048, %s321_s23, [#allocation12], %s1817_s17, %s1817_s17, %s1818_s27  }
  0x84   : > { %s1204_s9 = sadd.s32 4294967294, %s1809_s12   ;;  %s2025_s22 = sadd.s32 1, %s1809_s12  }
  0x85   : > { %s38_s24 = ssub.s32 %s1809_s12, %s2025_s22  ;;  %s41_s25 = sadd.s32 1, %s1805_s11 }
  0x86   : > { %p39_p1 = scmp.eq.s32.totalorder %s38_s24, 0  ;;  %p48_p3 = scmp.ne.s32.totalorder %s1805_s11, %s1801_s10 }
  0x87   : > { %p49_p7 = scmp.eq.s32.totalorder %s1809_s12, 0  ;;  %p54_p13 = scmp.ne.s32.totalorder %s1801_s10, %s1797_s30 }
  0x88   : > { %s2036_s26 = scalar_select %p39_p1, %s1805_s11, %s41_s25  }
  0x89   : > { %p2038_p0 = por %p49_p7, %p48_p3  ;;  %p2302_p2 = scmp.eq.s32.totalorder %s1898_s15, 0 }
  0x8a   : > { %2300 = sst [smem:[#allocation23_spill]] %s2036_s26  ;;  %p230_p4 = scmp.eq.s32.totalorder %s1898_s15, 2 }
  0x8b   : > { %p2044_p5 = por %p2302_p2, %p54_p13  ;;  %p236_p6 = scmp.eq.s32.totalorder %s1204_s9, 2 }
  0x8c   : > { %p1409_p8 = scmp.lt.s32.totalorder %s1809_s12, 3  ;;  %s340_s28 = sand.u32 1, %s1805_s11  }
  0x8d   : > { %s2303_s23 = scalar_select %p2044_p5, 1, 0 }
  0x8e   : > { %p2051_p9 = por %p230_p4, %p48_p3  ;;  %p2055_p10 = por %p236_p6, %p54_p13 }
  0x8f   : > { %s2059_s18 = sshll.u32 %s340_s28, 3  ;;  %s1283_s21 = sshll.u32 %s1809_s12, 7 }
  0x90   : > { %s2304_s29 = scalar_select %p2051_p9, 1, 0 }
  0x91   : > { %s2305_s13 = scalar_select %p2055_p10, 1, 0 }
  0x92   : > { %s2065_s20 = scalar_lea.hbm %s2273_s0, %s1283_s21  ;;  %s344_s14 = scalar_lea.vmem [#allocation2], %s2059_s18 }
  0x93   : > { %s352_s9 = sshll.u32 %s344_s14, 4  ;;  %p2072_p11 = pnand %p1409_p8, %p2038_p0  ;;  %s2068_s9 = int_to_ptr.vmem [resolvable:$true] %s352_s9 }
  0x94   : > { %s2079_s17 = scalar_lea.hbm %s2274_s1, %s1283_s21  ;;  %s359_s27 = sand.u32 1, %s1809_s12  }
  0x95   : > { %s341_s3 = scalar_lea.sflag [#allocation3], %s340_s28  ;;  %s1635_s4 = scalar_lea.hbm %s2065_s20, 128 }
  0x96   : > { %p1636_p12 = scmp.ne.s32.totalorder %s2065_s20, %s1635_s4  ;;  %p1637_p1 = pneg %p2072_p11 }
  0x97   : > { %s1640_s5 = scalar_lea.hbm %s2273_s0, 384  ;;  %p1641_p13 = scmp.lt.u32.totalorder %s2065_s20, %s2273_s0 }
  0x98   : > { %p1638_p3 = pnand %p1637_p1, %p1636_p12  ;;  %p1642_p0 = scmp.lt.u32.totalorder %s1640_s5, %s1635_s4 }
  0x99   : > { %p1644_p4 = scmp.lt.u32.totalorder %s1635_s4, %s2065_s20 }
  0x9a   : > { %p1639_p7 = pneg %p1638_p3  ;;  %p1643_p2 = por %p1642_p0, %p1641_p13 }
  0x9c   : > { %p1645_p6 = por %p1644_p4, %p1643_p2 }
  0x9e   : > { %p1646_p8 = pnand %p1645_p6, %p1639_p7 }
  0xa0   : > { %1649 = shalt.err (!%p1646_p8)
}
  0xa1   : > { %s1650_s28 = scalar_lea.vmem %s2068_s9, 128  ;;  %s1819_s21 = smov [#allocation2]  }
  0xa2   : > { %p1651_p12 = scmp.ne.s32.totalorder %s2068_s9, %s1650_s28  ;;  %s1655_s25 = sshll.u32 %s1819_s21, 4  ;;  %s1656_s25 = int_to_ptr.vmem [resolvable:$false] %s1655_s25 }
  0xa3   : > { %s1657_s26 = scalar_lea.vmem %s1656_s25, 256  ;;  %p1658_p9 = scmp.lt.s32.totalorder %s2068_s9, %s1656_s25 }
  0xa4   : > { %p1653_p3 = pnand %p1651_p12, %p1637_p1  ;;  %p1659_p13 = scmp.lt.s32.totalorder %s1657_s26, %s1650_s28 }
  0xa6   : > { %p1654_p10 = pneg %p1653_p3  ;;  %p1660_p0 = por %p1659_p13, %p1658_p9 }
  0xa8   : > { %p1661_p2 = pnand %p1660_p0, %p1654_p10 }
  0xaa   : > { %1664 = shalt.err (!%p1661_p2)
}
  0xab   : > { %1394 = dma.hbm_to_vmem [thread:$0]  (!%p2072_p11), %s2065_s20, 128, %s2068_s9, %s341_s3  }
  0xac   : > { %s363_s4 = scalar_lea.vmem [#allocation5], %s2059_s18  ;;  %s360_s19 = scalar_lea.sflag [#allocation6], %s359_s27 }
  0xad   : > { %s370_s5 = sshll.u32 %s363_s4, 4  ;;  %s1665_s14 = scalar_lea.hbm %s2079_s17, 128  ;;  %s371_s5 = int_to_ptr.vmem [resolvable:$true] %s370_s5 }
  0xae   : > { %p1666_p9 = scmp.ne.s32.totalorder %s2079_s17, %s1665_s14  ;;  %s1670_s21 = scalar_lea.hbm %s2274_s1, 384 }
  0xaf   : > { %p1671_p4 = scmp.lt.u32.totalorder %s2079_s17, %s2274_s1  ;;  %p1672_p6 = scmp.lt.u32.totalorder %s1670_s21, %s1665_s14 }
  0xb0   : > { %p1668_p10 = pnand %p1666_p9, %p1637_p1  ;;  %p1674_p12 = scmp.lt.u32.totalorder %s1665_s14, %s2079_s17 }
  0xb1   : > { %p1673_p8 = por %p1672_p6, %p1671_p4 }
  0xb2   : > { %p1669_p7 = pneg %p1668_p10 }
  0xb3   : > { %p1675_p3 = por %p1674_p12, %p1673_p8 }
  0xb5   : > { %p1676_p13 = pnand %p1675_p3, %p1669_p7 }
  0xb7   : > { %1679 = shalt.err (!%p1676_p13)
}
  0xb8   : > { %s1680_s3 = scalar_lea.vmem %s371_s5, 128  ;;  %s1820_s18 = smov [#allocation5]  }
  0xb9   : > { %p1681_p0 = scmp.ne.s32.totalorder %s371_s5, %s1680_s3  ;;  %s1685_s20 = sshll.u32 %s1820_s18, 4  ;;  %s1686_s20 = int_to_ptr.vmem [resolvable:$false] %s1685_s20 }
  0xba   : > { %s1687_s9 = scalar_lea.vmem %s1686_s20, 256  ;;  %p1688_p10 = scmp.lt.s32.totalorder %s371_s5, %s1686_s20 }
  0xbb   : > { %p1683_p2 = pnand %p1681_p0, %p1637_p1  ;;  %p1689_p5 = scmp.lt.s32.totalorder %s1687_s9, %s1680_s3 }
  0xbd   : > { %p1684_p9 = pneg %p1683_p2  ;;  %p1690_p4 = por %p1689_p5, %p1688_p10 }
  0xbf   : > { %p1691_p6 = pnand %p1690_p4, %p1684_p9 }
  0xc1   : > { %1694 = shalt.err (!%p1691_p6)
}
  0xc2   : > { %1397 = dma.hbm_to_vmem [thread:$0]  (!%p2072_p11), %s2079_s17, 128, %s371_s5, %s360_s19  }
  0xc3   : > { %p2307_p7 = scmp.ne.s32.totalorder %s2293_s16, 0 }
  0xc4   : > { %s2132_s27 = sand.u32 (!%p2307_p7), 1, %s1801_s10   ;;  %p2308_p5 = scmp.ne.s32.totalorder (!%p2307_p7), %s2303_s23, 0 }
  0xc5   : > { %379 = sbr.rel (%p2307_p7) target bundleno = 1297 (0x511), region = 52  ;;  %s1217_s4 = sshll.u32 (!%p2307_p7), %s2132_s27, 3 }
  0xc6   : > { %s382_s14 = scalar_lea.sflag (!%p2307_p7), [#allocation3], %s2132_s27  ;;  %s2136_s2 = scalar_lea.vmem (!%p2307_p7), [#allocation2], %s1217_s4 }
  0xcc   : > { %1768 = dma.done.wait (%p2308_p5), %s382_s14, 128  }
  0xcd   : > { %1770 = vsyncadd (%p2308_p5), %s382_s14, 4294967168  ;;  %s390_s24 = sand.u32 1, %s1898_s15   ;;  %s2143_s17 = scalar_lea.vmem [#allocation5], %s1217_s4 }
  0xce   : > { %s391_s16 = scalar_lea.sflag [#allocation6], %s390_s24 }
  0xcf   : > { %1772 = dma.done.wait (%p2308_p5), %s391_s16, 128  }
  0xd0   : > { %1774 = vsyncadd (%p2308_p5), %s391_s16, 4294967168  ;;  %p2309_p11 = scmp.eq.s32.totalorder %s1898_s15, 0 }
  0xd2   : > { %1776 = dma.done.wait (%p2309_p11), [#allocation6], 2048   ;;  %p2310_p1 = pmov %p2309_p11 }
  0xd4   : > { %1778 = vsyncadd (%p2310_p1), [#allocation6], 4294965248  ;;  %p2311_p8 = pmov %p2310_p1 }
  0xd5   : > { %p2312_p12 = pmov %p2310_p1 }
  0xd6   : > { %1780 = dma.done.wait (%p2311_p8), [#allocation9], 1536  }
  0xd7   : > { %1782 = vsyncadd (%p2312_p12), [#allocation9], 4294965760  ;;  %p2313_p3 = pmov %p2310_p1 }
  0xd8   : > { %p2314_p13 = pmov %p2310_p1 }
  0xd9   : > { %1784 = dma.done.wait (%p2313_p3), [#allocation12], 2048  }
  0xda   : > { %1786 = vsyncadd (%p2314_p13), [#allocation12], 4294965248  ;;  %v1821_v0 = vmov 0.0   ;;  %v1459_v1 = vld [vmem:[#allocation7 + $0x40] sm:$0xff]   ;;  %v1461_v3 = vld [vmem:[#allocation7 + $0x48] sm:$0xff]   ;;  %vm1822_vm0 = vmmov 0  }
  0xdb   : > { %1322 = vmatprep.subr.bf16.mxu1 %v1821_v0  ;;  %v1460_v2 = vld [vmem:[#allocation7] sm:$0xff]   ;;  %1286 = vmatprep.subr.bf16.mxu0 %v1459_v1  ;;  %v1462_v4 = vld [vmem:[#allocation7 + $0x8] sm:$0xff]   ;;  %v1463_v5 = vld [vmem:[#allocation7 + $0x50] sm:$0xff]   ;;  %s1223_s19 = sshll.u32 %s2132_s27, 4  ;;  %s1823_s26 = smov 64   ;;  %vm796_vm1 = vcmask 523264  }
  0xdc   : > { %1287 = vmatpush3.bf16.msra.mxu0 %v1460_v2  ;;  %v1464_v6 = vld [vmem:[#allocation7 + $0x10] sm:$0xff]   ;;  %v1465_v7 = vld [vmem:[#allocation7 + $0x58] sm:$0xff]   ;;  %v1467_v9 = vld [vmem:[#allocation7 + $0x60] sm:$0xff]   ;;  %1338 = vmatprep.mubr.msk.bf16.mxu1 %vm1822_vm0, %v1821_v0  ;;  %s2184_s25 = scalar_lea.vmem [#allocation13], %s1223_s19  ;;  %s1284_s20 = sshll.u32 %s1898_s15, 8 }
  0xdd   : > { %1288 = vmatprep.subr.bf16.mxu0 %v1461_v3  ;;  %v1466_v8 = vld [vmem:[#allocation7 + $0x18] sm:$0xff]   ;;  %v1468_v10 = vld [vmem:[#allocation7 + $0x20] sm:$0xff]   ;;  %v1469_v11 = vld [vmem:[#allocation7 + $0x68] sm:$0xff]   ;;  %s1027_s9 = sshll.u32 %s2184_s25, 4  ;;  %s1008_s24 = scalar_lea.sflag [#allocation4], %s2132_s27  ;;  %s1028_s9 = int_to_ptr.vmem [resolvable:$true] %s1027_s9 }
  0xde   : > { %v456_v12 = vld [vmem:[%s2136_s2] sm:$0xff]  ;;  %v1471_v16 = vld [vmem:[#allocation7 + $0x70] sm:$0xff]   ;;  %v1473_v19 = vld [vmem:[#allocation7 + $0x78] sm:$0xff]   ;;  %s2200_s2 = scalar_lea.hbm %s2281_s8, %s1284_s20  ;;  %s1695_s16 = scalar_lea.vmem %s1028_s9, 256 }
  0xdf   : > { %v1227_v13 = vcombine.high %v456_v12, %v456_v12  ;;  %v1477_v14 = vld [vmem:[#allocation8] sm:$0xff]   ;;  %v1470_v15 = vld [vmem:[#allocation7 + $0x28] sm:$0xff]   ;;  %v1472_v18 = vld [vmem:[#allocation7 + $0x30] sm:$0xff]   ;;  %v1226_v23 = vcombine.low %v456_v12, %v456_v12  ;;  %p1696_p0 = scmp.ne.s32.totalorder %s1028_s9, %s1695_s16  ;;  %p2315_p2 = scmp.ne.s32.totalorder %s2304_s29, 0 }
  0xe0   : > { %1289 = vmatpush3.bf16.msra.mxu0 %v1462_v4  ;;  %1323 = vmatpush3.bf16.msra.mxu1 %v1477_v14  ;;  %v1478_v17 = vld [vmem:[#allocation8 + $0x8] sm:$0xff]   ;;  %v1479_v20 = vld [vmem:[#allocation8 + $0x10] sm:$0xff]   ;;  %v1474_v21 = vld [vmem:[#allocation7 + $0x38] sm:$0xff]  }
  0xe1   : > { %1290 = vmatprep.subr.bf16.mxu0 %v1463_v5  ;;  %629 = vmatprep.mubr.bf16.mxu0 %v1227_v13  ;;  %v1480_v22 = vld [vmem:[#allocation8 + $0x18] sm:$0xff]   ;;  %v1481_v24 = vld [vmem:[#allocation8 + $0x20] sm:$0xff]   ;;  %v1482_v25 = vld [vmem:[#allocation8 + $0x28] sm:$0xff]   ;;  %p1697_p9 = pnand %p1696_p0, %p2315_p2 }
  0xe2   : > { %1324 = vmatprep.subr.bf16.mxu1 %v1821_v0  ;;  %v1483_v26 = vld [vmem:[#allocation8 + $0x30] sm:$0xff]   ;;  %v1484_v27 = vld [vmem:[#allocation8 + $0x38] sm:$0xff]   ;;  %v1225_v29 = vld [vmem:[%s2279_s6] ss:$0 sm:$0xff] }
  0xe3   : > { %v1485_v37 = vld [vmem:[#allocation10] sm:$0xff]   ;;  %v1486_v38 = vld [vmem:[#allocation10 + $0x8] sm:$0xff]   ;;  %v1487_v44 = vld [vmem:[#allocation10 + $0x10] sm:$0xff]   ;;  %p1698_p10 = pneg %p1697_p9 }
  0xe4   : > { %1291 = vmatpush3.bf16.msra.mxu0 %v1464_v6  ;;  %1325 = vmatpush3.bf16.msra.mxu1 %v1478_v17  ;;  %v1244_v39 = vld [vmem:[%s2279_s6 + $0x1] ss:$0 sm:$0xff]  ;;  %v1488_v48 = vld [vmem:[#allocation10 + $0x18] sm:$0xff]   ;;  %v1491_v50 = vld [vmem:[#allocation11 + $0x4] ss:$8 sps:$4 sm:$0xff]  }
  0xe5   : > { %1292 = vmatprep.subr.bf16.mxu0 %v1465_v7  ;;  %1326 = vmatprep.subr.bf16.mxu1 %v1821_v0  ;;  %v1489_v49 = vld [vmem:[#allocation11] ss:$8 sps:$4 sm:$0xff]   ;;  %v1494_v51 = vld [vmem:[#allocation11 + $0x14] ss:$8 sps:$4 sm:$0xff]   ;;  %v1492_v52 = vld [vmem:[#allocation11 + $0x10] ss:$8 sps:$4 sm:$0xff]  }
  0xe6   : > { %v1497_v53 = vld [vmem:[#allocation11 + $0x24] ss:$8 sps:$4 sm:$0xff]   ;;  %v1495_v55 = vld [vmem:[#allocation11 + $0x20] ss:$8 sps:$4 sm:$0xff]   ;;  %v1500_v56 = vld [vmem:[#allocation11 + $0x34] ss:$8 sps:$4 sm:$0xff]  }
  0xe7   : > { %v1498_v57 = vld [vmem:[#allocation11 + $0x30] ss:$8 sps:$4 sm:$0xff]   ;;  %v1503_v58 = vld [vmem:[#allocation11 + $0x44] ss:$8 sps:$4 sm:$0xff]   ;;  %v1501_v59 = vld [vmem:[#allocation11 + $0x40] ss:$8 sps:$4 sm:$0xff]  }
  0xe8   : > { %1293 = vmatpush3.bf16.msra.mxu0 %v1466_v8  ;;  %1327 = vmatpush3.bf16.msra.mxu1 %v1479_v20  ;;  %v1506_v60 = vld [vmem:[#allocation11 + $0x54] ss:$8 sps:$4 sm:$0xff]   ;;  %v1504_v61 = vld [vmem:[#allocation11 + $0x50] ss:$8 sps:$4 sm:$0xff]   ;;  %v1509_v62 = vld [vmem:[#allocation11 + $0x64] ss:$8 sps:$4 sm:$0xff]  }
  0xe9   : > { %1294 = vmatprep.subr.bf16.mxu0 %v1467_v9  ;;  %1328 = vmatprep.subr.bf16.mxu1 %v1821_v0  ;;  %v1507_v63 = vld [vmem:[#allocation11 + $0x60] ss:$8 sps:$4 sm:$0xff]   ;;  %v1512_v5 = vld [vmem:[#allocation11 + $0x74] ss:$8 sps:$4 sm:$0xff]   ;;  %v1510_v6 = vld [vmem:[#allocation11 + $0x70] ss:$8 sps:$4 sm:$0xff]  }
  0xea   : > { %v1824_v7 = vmov 0   ;;  %v1253_v8 = vld [vmem:[%s2279_s6 + $0x2] ss:$0 sm:$0xff] }
  0xec   : > { %1295 = vmatpush3.bf16.msra.mxu0 %v1468_v10  ;;  %1329 = vmatpush3.bf16.msra.mxu1 %v1480_v22 }
  0xed   : > { %1296 = vmatprep.subr.bf16.mxu0 %v1469_v11  ;;  %1330 = vmatprep.subr.bf16.mxu1 %v1821_v0 }
  0xf0   : > { %1297 = vmatpush3.bf16.msra.mxu0 %v1470_v15  ;;  %1331 = vmatpush3.bf16.msra.mxu1 %v1481_v24 }
  0xf1   : > { %1298 = vmatprep.subr.bf16.mxu0 %v1471_v16  ;;  %1332 = vmatprep.subr.bf16.mxu1 %v1821_v0 }
  0xf4   : > { %1299 = vmatpush3.bf16.msra.mxu0 %v1472_v18  ;;  %1333 = vmatpush3.bf16.msra.mxu1 %v1482_v25 }
  0xf5   : > { %1300 = vmatprep.subr.bf16.mxu0 %v1473_v19  ;;  %1334 = vmatprep.subr.bf16.mxu1 %v1821_v0 }
  0xf8   : > { %1301 = vmatpush3.bf16.msra.mxu0 %v1474_v21  ;;  %1335 = vmatpush3.bf16.msra.mxu1 %v1483_v26 }
  0xf9   : > { %1342 = vmatprep.subr.bf16.mxu0 %v1821_v0  ;;  %1336 = vmatprep.subr.bf16.mxu1 %v1821_v0 }
  0xfb   : > { %630 = vmatmul.mubr.bf16.vlgmr.msra.gmra.mrb[0].mxu0 %v1226_v23 }
  0xfc   : > { %1337 = vmatpush3.bf16.msra.mxu1 %v1484_v27  ;;  %1350 = vmatprep.mubr.msk.bf16.mxu0 %vm1822_vm0, %v1821_v0 }
  0xfd   : > { %1343 = vmatpush3.bf16.msra.mxu0 %v1485_v37  ;;  %950 = vmatprep.subr.bf16.mxu1 %v1491_v50 }
  0xfe   : > { %1344 = vmatprep.subr.bf16.mxu0 %v1821_v0 }
 0x101   : > { %1345 = vmatpush3.bf16.msra.mxu0 %v1486_v38 }
 0x102   : > { %1346 = vmatprep.subr.bf16.mxu0 %v1821_v0 }
 0x105   : > { %1347 = vmatpush3.bf16.msra.mxu0 %v1487_v44 }
 0x106   : > { %1348 = vmatprep.subr.bf16.mxu0 %v1821_v0  ;;  %v748_v0 = vld [vmem:[%s2143_s17] sm:$0xff]  ;;  %s1825_s17 = smov [#allocation13]  }
 0x107   : > { %s1699_s23 = sshll.u32 %s1825_s17, 4  ;;  %s1700_s23 = int_to_ptr.vmem [resolvable:$false] %s1699_s23 }
 0x108   : > { %s1701_s5 = scalar_lea.vmem %s1700_s23, 512  ;;  %p1702_p4 = scmp.lt.s32.totalorder %s1028_s9, %s1700_s23 }
 0x109   : > { %1349 = vmatpush3.bf16.msra.mxu0 %v1488_v48  ;;  %p1703_p6 = scmp.lt.s32.totalorder %s1701_s5, %s1695_s16 }
 0x10b   : > { %p1704_p7 = por %p1703_p6, %p1702_p4 }
 0x10d   : > { %p1705_p5 = pnand %p1704_p7, %p1698_p10 }
 0x1ce   : > { %v1302_v28 = vpop.f32.mrb[0].mxu0 }
 0x1cf   : > { %v1303_v30 = vpop.f32.mrb[1].mxu0 }
 0x1d0   : > { %v1304_v31 = vadd.f32 %v1303_v30, %v1302_v28  ;;  %v1305_v32 = vpop.f32.mrb[2].mxu0 }
 0x1d1   : > { %v1306_v33 = vpop.f32.mrb[3].mxu0 }
 0x1d2   : > { %v632_v34 = vadd.f32 %v1304_v31, %v1225_v29 }
 0x1d4   : > { %v637_v35 = vmax.f32 %v632_v34, 0.0 }
 0x1d6   : > { %v638_v36 = vpack.c.bf16 %v637_v35, %v637_v35 }
 0x1d8   : > { %1339 = vmatmul.mubr.bf16.vlgmr.msra.gmra.mrb[0].mxu1 %v638_v36 }
 0x1d9   : > { %951 = vmatpush1.bf16.msra.mxu1 %v1489_v49  ;;  %982 = vmatprep.mubr.bf16.mxu1 %v1824_v7 }
 0x1da   : > { %952 = vmatprep.subr.bf16.mxu1 %v1494_v51 }
 0x1dd   : > { %953 = vmatpush1.bf16.msra.mxu1 %v1492_v52 }
 0x1de   : > { %954 = vmatprep.subr.bf16.mxu1 %v1497_v53 }
 0x1e1   : > { %955 = vmatpush1.bf16.msra.mxu1 %v1495_v55 }
 0x1e2   : > { %956 = vmatprep.subr.bf16.mxu1 %v1500_v56 }
 0x1e5   : > { %957 = vmatpush1.bf16.msra.mxu1 %v1498_v57 }
 0x1e6   : > { %958 = vmatprep.subr.bf16.mxu1 %v1503_v58 }
 0x1e9   : > { %959 = vmatpush1.bf16.msra.mxu1 %v1501_v59 }
 0x1ea   : > { %960 = vmatprep.subr.bf16.mxu1 %v1506_v60 }
 0x1ed   : > { %961 = vmatpush1.bf16.msra.mxu1 %v1504_v61 }
 0x1ee   : > { %962 = vmatprep.subr.bf16.mxu1 %v1509_v62 }
 0x1f1   : > { %963 = vmatpush1.bf16.msra.mxu1 %v1507_v63 }
 0x1f2   : > { %964 = vmatprep.subr.bf16.mxu1 %v1512_v5 }
 0x1f5   : > { %965 = vmatpush1.bf16.msra.mxu1 %v1510_v6 }
 0x2ab   : > { %v742_v40 = vpop.f32.mrb[0].mxu1 }
 0x2ac   : > { %v743_v41 = vadd.f32 %v1244_v39, %v742_v40  ;;  %v1340_v42 = vpop.f32.mrb[1].mxu1 }
 0x2ad   : > { %v745_v43 = vpop.f32.mrb[2].mxu1 }
 0x2ae   : > { %v749_v45 = vmul.f32 0.5, %v743_v41  ;;  %1005 = vst [vmem:[%s2184_s25] sm:$0xff] %v743_v41  ;;  %v1341_v46 = vpop.f32.mrb[3].mxu1 }
 0x2b0   : > { %v750_v47 = vmul.f32 1.442695, %v749_v45 }
 0x2b2   : > { %1513 = vpow2.f32 %v750_v47 }
 0x2bc   : > { %v1514_v54 = vpop.eup %1513 }
 0x2bd   : > { %753 = vrot.lane.b32.xlu0 %v1514_v54, %s1823_s26 }
 0x32f   : > { %v754_v1 = vpop.permute.xlu0 %753 }
 0x330   : > { %v756_v2 = vmul.f32 %v754_v1, %v748_v0 }
 0x332   : > { %v757_v3 = vadd.f32 %v756_v2, %v743_v41 }
 0x334   : > { %v758_v4 = vpack.c.bf16 %v757_v3, %v757_v3  ;;  %1006 = vst.msk [vmem:[%s2184_s25 + $0x8] sm:$0xff] %vm796_vm1, %v757_v3 }
 0x336   : > { %1351 = vmatmul.mubr.msk.bf16.vlgmr.msra.gmra.mrb[4].mxu0 %vm796_vm1, %v758_v4 }
 0x409   : > { %v834_v9 = vpop.f32.mrb[4].mxu0 }
 0x40a   : > { %v835_v10 = vadd.f32 %v1253_v8, %v834_v9  ;;  %v1352_v11 = vpop.f32.mrb[5].mxu0 }
 0x40b   : > { %v837_v12 = vpop.f32.mrb[6].mxu0 }
 0x40c   : > { %v840_v13 = vmax.f32 %v835_v10, 0.0  ;;  %v1353_v14 = vpop.f32.mrb[7].mxu0 }
 0x40e   : > { %v841_v15 = vpack.c.bf16 %v840_v13, %v840_v13 }
 0x410   : > { %983 = vmatmul.mubr.bf16.vlgmr.msra.gmra.mrb[4].mxu1 %v841_v15 }
 0x411   : > { %1708 = shalt.err (!%p1705_p5)
}
 0x412   : > { %s1709_s28 = scalar_lea.hbm %s2200_s2, 256  ;;  %s1713_s26 = scalar_lea.hbm %s2281_s8, 768 }
 0x413   : > { %p1710_p11 = scmp.ne.s32.totalorder %s2200_s2, %s1709_s28  ;;  %p1714_p12 = scmp.lt.u32.totalorder %s2200_s2, %s2281_s8 }
 0x414   : > { %p1715_p3 = scmp.lt.u32.totalorder %s1713_s26, %s1709_s28  ;;  %p1717_p0 = scmp.lt.u32.totalorder %s1709_s28, %s2200_s2 }
 0x415   : > { %p1711_p1 = pnand %p1710_p11, %p2315_p2 }
 0x416   : > { %p1716_p13 = por %p1715_p3, %p1714_p12 }
 0x417   : > { %p1712_p8 = pneg %p1711_p1 }
 0x418   : > { %p1718_p9 = por %p1717_p0, %p1716_p13 }
 0x41a   : > { %p1719_p10 = pnand %p1718_p9, %p1712_p8 }
 0x41c   : > { %1722 = shalt.err (!%p1719_p10)
}
 0x41d   : > { %1374 = dma.vmem_to_hbm [thread:$0]  (%p2315_p2), %s1028_s9, 256, %s2200_s2, %s1008_s24   ;;  %v860_v16 = vlaneseq  ;;  %v858_v19 = vld [vmem:[%s2280_s7] sm:$0x3] }
 0x41e   : > { %s454_s9 = scalar_lea.vmem [#allocation14], %s1223_s19  ;;  %s2316_s17 = sld [smem:[#allocation28_spill]] }
 0x41f   : > { %v861_v17 = vshrl.u32 %v860_v16, 7  ;;  %s1041_s2 = sshll.u32 %s454_s9, 4  ;;  %s1013_s5 = scalar_lea.sflag [#allocation15], %s2132_s27  ;;  %s2232_s2 = int_to_ptr.vmem [resolvable:$true] %s1041_s2 }
 0x420   : > { %s1723_s28 = scalar_lea.vmem %s2232_s2, 256  ;;  %s1826_s15 = smov [#allocation14]  }
 0x421   : > { %v862_v18 = vsub.s32 0, %v861_v17  ;;  %v866_v20 = vsub.s32 1, %v861_v17  ;;  %p1724_p4 = scmp.ne.s32.totalorder %s2232_s2, %s1723_s28  ;;  %s1727_s19 = sshll.u32 %s1826_s15, 4  ;;  %s1728_s19 = int_to_ptr.vmem [resolvable:$false] %s1727_s19 }
 0x422   : > { %s1729_s21 = scalar_lea.vmem %s1728_s19, 512  ;;  %p1730_p5 = scmp.lt.s32.totalorder %s2232_s2, %s1728_s19 }
 0x423   : > { %v863_v21 = vrot.slane %v858_v19, %v862_v18  ;;  %v867_v22 = vrot.slane %v858_v19, %v866_v20  ;;  %p1725_p6 = pnand %p1724_p4, %p2315_p2  ;;  %p1731_p11 = scmp.lt.s32.totalorder %s1729_s21, %s1723_s28 }
 0x424   : > { %s2230_s23 = scalar_lea.hbm %s2316_s17, %s1284_s20 }
 0x425   : > { %p1726_p7 = pneg %p1725_p6  ;;  %p1732_p1 = por %p1731_p11, %p1730_p5 }
 0x427   : > { %p1733_p8 = pnand %p1732_p1, %p1726_p7 }
 0x4e3   : > { %v984_v23 = vpop.f32.mrb[4].mxu1 }
 0x4e4   : > { %v985_v24 = vadd.f32 %v984_v23, %v863_v21  ;;  %v986_v25 = vpop.f32.mrb[5].mxu1 }
 0x4e5   : > { %v987_v26 = vadd.f32 %v986_v25, %v867_v22  ;;  %v988_v27 = vpop.f32.mrb[6].mxu1 }
 0x4e6   : > { %v991_v28 = vsub.f32 0.0, %v985_v24  ;;  %v989_v29 = vpop.f32.mrb[7].mxu1 }
 0x4e7   : > { %v992_v30 = vsub.f32 0.0, %v987_v26 }
 0x4e8   : > { %v993_v31 = vmul.f32 1.442695, %v991_v28 }
 0x4e9   : > { %v995_v32 = vmul.f32 1.442695, %v992_v30 }
 0x4ea   : > { %1515 = vpow2.f32 %v993_v31 }
 0x4eb   : > { %1517 = vpow2.f32 %v995_v32 }
 0x4f4   : > { %v1516_v33 = vpop.eup %1515 }
 0x4f5   : > { %v1518_v34 = vpop.eup %1517  ;;  %v997_v35 = vadd.f32 1.0, %v1516_v33 }
 0x4f6   : > { %v998_v36 = vadd.f32 1.0, %v1518_v34 }
 0x4f7   : > { %1519 = vrcp.f32 %v997_v35 }
 0x4f8   : > { %1521 = vrcp.f32 %v998_v36 }
 0x501   : > { %v1520_v37 = vpop.eup %1519 }
 0x502   : > { %v1522_v38 = vpop.eup %1521  ;;  %1003 = vst [vmem:[%s454_s9] sm:$0xff] %v1520_v37 }
 0x503   : > { %1004 = vst [vmem:[%s454_s9 + $0x8] sm:$0xff] %v1522_v38 }
 0x504   : > { %1736 = shalt.err (!%p1733_p8)
}
 0x505   : > { %s1737_s27 = scalar_lea.hbm %s2230_s23, 256  ;;  %s1741_s26 = scalar_lea.hbm %s2316_s17, 768 }
 0x506   : > { %p1738_p12 = scmp.ne.s32.totalorder %s2230_s23, %s1737_s27  ;;  %p1742_p0 = scmp.lt.u32.totalorder %s2230_s23, %s2316_s17 }
 0x507   : > { %p1743_p9 = scmp.lt.u32.totalorder %s1741_s26, %s1737_s27  ;;  %p1745_p4 = scmp.lt.u32.totalorder %s1737_s27, %s2230_s23 }
 0x508   : > { %p1739_p3 = pnand %p1738_p12, %p2315_p2 }
 0x509   : > { %p1744_p10 = por %p1743_p9, %p1742_p0 }
 0x50a   : > { %p1740_p13 = pneg %p1739_p3 }
 0x50b   : > { %p1746_p6 = por %p1745_p4, %p1744_p10 }
 0x50d   : > { %p1747_p7 = pnand %p1746_p6, %p1740_p13 }
 0x50f   : > { %1750 = shalt.err (!%p1747_p7)
}
 0x510   : > { %1375 = dma.vmem_to_hbm [thread:$0]  (%p2315_p2), %s2232_s2, 256, %s2230_s23, %s1013_s5  }
 0x511 PF: > { %p1414_p5 = scmp.ge.s32.totalorder %s1809_s12, 2  ;;  %s1053_s4 = sand.u32 1, %s1797_s30  }
 0x512   : > { %p2317_p11 = scmp.ne.s32.totalorder %s2305_s13, 0  ;;  %s1054_s14 = scalar_lea.sflag [#allocation4], %s1053_s4 }
 0x514   : > { %p1399_p1 = pnand %p1414_p5, %p2317_p11 }
 0x516   : > { %1788 = dma.done.wait (!%p1399_p1), %s1054_s14, 256  }
 0x517   : > { %1790 = vsyncadd (!%p1399_p1), %s1054_s14, 4294967040  ;;  %s1063_s9 = scalar_lea.sflag [#allocation15], %s1053_s4 }
 0x518   : > { %1792 = dma.done.wait (!%p1399_p1), %s1063_s9, 256  }
 0x519   : > { %1794 = vsyncadd (!%p1399_p1), %s1063_s9, 4294967040  ;;  %s2318_s29 = sld [smem:[#allocation23_spill]]  ;;  %p31_p2 = scmp.ge.s32.totalorder %s2025_s22, 5  }
 0x51a   : > { %s2319_s30 = smov %s1801_s10  ;;  %s2320_s10 = smov %s1805_s11 }
 0x51b   : > { %s2322_s12 = smov %s2025_s22  ;;  %33 = sbr.rel (!%p31_p2) target bundleno = 17 (0x11), region = 143 }
 0x51f   : > { %s2321_s11 = smov %s2318_s29 }
 0x522   :  { %1068 = vsyncpa [#allocation3], 1 }
 0x523   :  { %1070 = vsyncpa [#allocation3 + $0x1], 1 }
 0x524   :  { %1071 = vsyncpa [#allocation6], 1 }
 0x525   :  { %1073 = vsyncpa [#allocation6 + $0x1], 1 }
 0x526   :  { %1074 = vsyncpa [#allocation9], 1 }
 0x527   :  { %1075 = vsyncpa [#allocation12], 1 }
 0x528   :  { %1076 = vsyncpa [#allocation4], 1 }
 0x529   :  { %1078 = vsyncpa [#allocation4 + $0x1], 1 }
 0x52a   :  { %1079 = vsyncpa [#allocation15], 1 }
 0x52b   :  { %1081 = vsyncpa [#allocation15 + $0x1], 1 }

</bundles_post_ra>
